<compile_context>
chip_gen: v5e
topology: v5e:2x2
jax: 0.10.0
libtpu: 0.0.40
codegen_flags: <defaults>
</compile_context>

<pallas_src>
import jax
import jax.numpy as jnp
from jax.experimental import pallas as pl
from jax.experimental.pallas import tpu as pltpu

_LANES = 128
_SUBLANES = 8


def _pgc_kernel(p_ref, table_ref, out_ref):
    # p_ref:     [D, R, 128] f32   per-partition probabilities, batch on (sublane, lane)
    # table_ref: [2^D]       f32   SMEM: logdet(L0[S,S]) - alpha  (NaN if that det < 0)
    # out_ref:   [R, 128]    f32   logdet(L_b) - alpha
    D = p_ref.shape[0]
    nmask = table_ref.shape[0]
    shp = out_ref.shape

    # Per-sample: subset mask of non-zero probabilities + sum of their logs.
    logsum = jnp.zeros(shp, jnp.float32)
    mask = jnp.zeros(shp, jnp.int32)
    for j in range(D):                            # D is tiny/static -> unrolled
        pj = p_ref[j]                             # [R, 128] full-density vregs
        nz = pj > 0.0
        logsum = logsum + jnp.where(nz, jnp.log(pj), 0.0)   # log(0) masked away
        mask = mask + nz.astype(jnp.int32) * (1 << j)

    # Subset logdet (with -alpha folded) via a scalar-operand select chain over
    # the 2^D SMEM table entries.  D is assumed small (2^D unrolled selects).
    base = jnp.full(shp, table_ref[0], jnp.float32)
    for m in range(1, nmask):
        base = jnp.where(mask == m, table_ref[m], base)

    out_ref[...] = base + logsum


def _choose_block_rows(rows_total, target_rows=256):
    """Block height in 128-lane rows.

    Multiple of 8, divides rows_total, close to target_rows (256 rows = 32K
    samples), and capped at rows_total//2 so the 'parallel' grid axis keeps
    >= 2 steps for the two v7x TensorCores whenever the batch allows it.
    """
    if rows_total <= _SUBLANES:
        return rows_total
    cap = min(target_rows, max(_SUBLANES, rows_total // 2))
    best = _SUBLANES
    r = _SUBLANES
    while r <= cap:
        if rows_total % r == 0:
            best = r
        r += _SUBLANES
    return best


def simple_pgc_forward(x, partition, W_list, B, block_rows=None):
    """Pallas-backed SimplePGC.forward.  x: [batch, n] int (binary)."""
    batch = x.shape[0]
    D = len(partition)
    nmask = 1 << D                                # subset table size (D is small)

    # ---- per-partition probabilities p^T [D, batch] (parameter glue + gather) ----
    p_rows = []
    for i, part in enumerate(partition):
        w = jax.nn.softmax(W_list[i].astype(jnp.float32))
        w_full = jnp.concatenate([jnp.zeros((1,), jnp.float32), w])
        idx = jnp.zeros((batch,), jnp.int32)
        for j, col in enumerate(part):
            idx = idx + x[:, col].astype(jnp.int32) * (1 << j)
        p_rows.append(w_full[idx])
    p_t = jnp.stack(p_rows, axis=0)               # [D, batch] f32

    # ---- batch-independent math, hoisted out of the kernel ----
    eps = 1e-8
    Bf = B.astype(jnp.float32)
    I = jnp.eye(D, dtype=jnp.float32)
    L0 = Bf.T @ Bf + eps * I
    s0, la0 = jnp.linalg.slogdet(L0 + I)
    alpha = jnp.where(s0 < 0.0, jnp.nan, la0)     # scalar

    # Subset logdet table: A_mask has columns j outside S zeroed with a unit
    # diagonal entry, so det(A_mask) = det(L0[S,S]).
    masks = jnp.arange(nmask, dtype=jnp.int32)
    sel = ((masks[:, None] >> jnp.arange(D, dtype=jnp.int32)[None, :]) & 1
           ).astype(jnp.float32)                  # [2^D, D]
    A = L0[None, :, :] * sel[:, None, :]
    diag_zero = (I[None, :, :] == 1.0) & (sel[:, None, :] == 0.0)
    A = jnp.where(diag_zero, 1.0, A)
    sgn, ld = jnp.linalg.slogdet(A)               # [2^D]
    table = jnp.where(sgn < 0.0, jnp.nan, ld) - alpha   # fold alpha (torch NaN rule)
    table = table.astype(jnp.float32)

    # ---- full-density (8,128) layout: pad batch and fold onto (rows, lanes) ----
    quantum = _SUBLANES * _LANES
    padded = ((batch + quantum - 1) // quantum) * quantum
    rows_total = padded // _LANES                 # multiple of 8
    p_pad = jnp.pad(p_t, ((0, 0), (0, padded - batch)), constant_values=1.0)
    p3 = p_pad.reshape(D, rows_total, _LANES)

    if block_rows is None:
        block_rows = _choose_block_rows(rows_total)
    assert rows_total % block_rows == 0
    grid = (rows_total // block_rows,)

    # Advisory cost: per sample D logs (EUP), ~6D + 2*2^D VALU ops, D+1 f32 of HBM.
    ce = pl.CostEstimate(
        flops=int(padded * (6 * D + 2 * nmask + 2)),
        transcendentals=int(padded * D),
        bytes_accessed=int(padded * 4 * (D + 1) + 4 * nmask),
    )

    out = pl.pallas_call(
        _pgc_kernel,
        out_shape=jax.ShapeDtypeStruct((rows_total, _LANES), jnp.float32),
        grid_spec=pltpu.PrefetchScalarGridSpec(
            num_scalar_prefetch=0,
            grid=grid,
            in_specs=[
                pl.BlockSpec((D, block_rows, _LANES), lambda b: (0, b, 0)),
                pl.BlockSpec(memory_space=pltpu.MemorySpace.SMEM),   # scalar table
            ],
            out_specs=pl.BlockSpec((block_rows, _LANES), lambda b: (b, 0)),
        ),
        compiler_params=pltpu.CompilerParams(
            dimension_semantics=("parallel",)),
        cost_estimate=ce,
    )(p3, table)
    return out.reshape(padded)[:batch]


def reference(x, partition, W_list, B):
    """Pure-JAX port of SimplePGC.forward for verification."""
    batch = x.shape[0]
    D = len(partition)
    p_cols = []
    for i, part in enumerate(partition):
        w = jax.nn.softmax(W_list[i].astype(jnp.float32))
        w_full = jnp.concatenate([jnp.zeros((1,), jnp.float32), w])
        idx = jnp.zeros((batch,), jnp.int32)
        for j, col in enumerate(part):
            idx = idx + x[:, col].astype(jnp.int32) * (1 << j)
        p_cols.append(w_full[idx])
    p = jnp.stack(p_cols, axis=-1)                # [batch, D]
    eps = 1e-8
    I = jnp.eye(D, dtype=jnp.float32)
    L0 = B.T @ B + eps * I
    L = L0[None, :, :] * p[:, None, :]
    cond = (I[None, :, :] == 1.0) & (p == 0.0)[:, None, :]
    L = jnp.where(cond, 1.0, L)
    sgn, la = jnp.linalg.slogdet(L)
    y = jnp.where(sgn < 0.0, jnp.nan, la)
    s0, la0 = jnp.linalg.slogdet(L0 + I)
    alpha = jnp.where(s0 < 0.0, jnp.nan, la0)
    return y - alpha


if __name__ == "__main__":
    key = jax.random.PRNGKey(0)
    n = 8
    partition = [[0, 1], [2, 3], [4, 5], [6, 7]]
    D = len(partition)
    batch = 50                                    # non-multiple of 128: exercises padding

    keys = jax.random.split(key, 2 + D)
    k_x, k_b, k_ws = keys[0], keys[1], keys[2:]

    # Binary input, [batch, n].
    x = jax.random.bernoulli(k_x, 0.5, (batch, n)).astype(jnp.int32)

    # Deterministic parameter init mirroring __init__:
    # B ~ randn, then column-normalized.  (Data-driven W init in Simple.__init__
    # is host-side preprocessing, not part of forward.)
    B = jax.random.normal(k_b, (D, D), jnp.float32)
    B = B / jnp.linalg.norm(B, axis=0, keepdims=True)
    # Each Simple PC: W ~ randn(m - 1), m = 2^len(part).
    W_list = [
        jax.random.normal(k_ws[i], ((1 << len(part)) - 1,), jnp.float32)
        for i, part in enumerate(partition)
    ]

    out = simple_pgc_forward(x, partition, W_list, B)
    out = jax.block_until_ready(out)

    ref = reference(x, partition, W_list, B)
    assert out.shape == (batch,)
    # f32 logdet via two different (mathematically identical) factorizations.
    assert jnp.allclose(out, ref, atol=1e-3, rtol=1e-3), (out, ref)

    print("KERNEL_OK")
</pallas_src>

<mosaic_0001>
module attributes {stable_mosaic.version = 11 : i64} {
  func.func @_pgc_kernel(%arg0: i32, %arg1: memref<4x8x128xf32, #tpu.memory_space<vmem>>, %arg2: memref<16xf32, #tpu.memory_space<smem>>, %arg3: memref<8x128xf32, #tpu.memory_space<vmem>>) attributes {dimension_semantics = [#tpu.dimension_semantics<parallel>], iteration_bounds = array<i64: 1>, scalar_prefetch = 0 : i64, scratch_operands = 0 : i64, tpu.core_type = #tpu.core_type<tc>, window_params = [{transform_indices = @transform_0, window_bounds = array<i64: 4, 8, 128>}, {transform_indices = @transform_1, window_bounds = array<i64: 16>}, {transform_indices = @transform_2, window_bounds = array<i64: 8, 128>}]} {
    %cst = arith.constant 0.000000e+00 : f32
    %0 = vector.broadcast %cst : f32 to vector<8x128xf32>
    %c0_i32 = arith.constant 0 : i32
    %1 = vector.broadcast %c0_i32 : i32 to vector<8x128xi32>
    %c0 = arith.constant 0 : index
    %c0_0 = arith.constant 0 : index
    %c0_1 = arith.constant 0 : index
    %2 = vector.load %arg1[%c0, %c0_0, %c0_1] : memref<4x8x128xf32, #tpu.memory_space<vmem>>, vector<1x8x128xf32>
    %3 = vector.shape_cast %2 : vector<1x8x128xf32> to vector<8x128xf32>
    %cst_2 = arith.constant 0.000000e+00 : f32
    %4 = vector.broadcast %cst_2 : f32 to vector<8x128xf32>
    %5 = arith.cmpf ogt, %3, %4 : vector<8x128xf32>
    %6 = math.log %3 : vector<8x128xf32>
    %cst_3 = arith.constant 0.000000e+00 : f32
    %7 = vector.broadcast %cst_3 : f32 to vector<8x128xf32>
    %8 = arith.select %5, %6, %7 : vector<8x128xi1>, vector<8x128xf32>
    %9 = arith.addf %0, %8 : vector<8x128xf32>
    %10 = arith.extui %5 : vector<8x128xi1> to vector<8x128xi32>
    %c1_i32 = arith.constant 1 : i32
    %11 = vector.broadcast %c1_i32 : i32 to vector<8x128xi32>
    %12 = arith.muli %10, %11 : vector<8x128xi32>
    %13 = arith.addi %1, %12 : vector<8x128xi32>
    %c1 = arith.constant 1 : index
    %c0_4 = arith.constant 0 : index
    %c0_5 = arith.constant 0 : index
    %14 = vector.load %arg1[%c1, %c0_4, %c0_5] : memref<4x8x128xf32, #tpu.memory_space<vmem>>, vector<1x8x128xf32>
    %15 = vector.shape_cast %14 : vector<1x8x128xf32> to vector<8x128xf32>
    %cst_6 = arith.constant 0.000000e+00 : f32
    %16 = vector.broadcast %cst_6 : f32 to vector<8x128xf32>
    %17 = arith.cmpf ogt, %15, %16 : vector<8x128xf32>
    %18 = math.log %15 : vector<8x128xf32>
    %cst_7 = arith.constant 0.000000e+00 : f32
    %19 = vector.broadcast %cst_7 : f32 to vector<8x128xf32>
    %20 = arith.select %17, %18, %19 : vector<8x128xi1>, vector<8x128xf32>
    %21 = arith.addf %9, %20 : vector<8x128xf32>
    %22 = arith.extui %17 : vector<8x128xi1> to vector<8x128xi32>
    %c2_i32 = arith.constant 2 : i32
    %23 = vector.broadcast %c2_i32 : i32 to vector<8x128xi32>
    %24 = arith.muli %22, %23 : vector<8x128xi32>
    %25 = arith.addi %13, %24 : vector<8x128xi32>
    %c2 = arith.constant 2 : index
    %c0_8 = arith.constant 0 : index
    %c0_9 = arith.constant 0 : index
    %26 = vector.load %arg1[%c2, %c0_8, %c0_9] : memref<4x8x128xf32, #tpu.memory_space<vmem>>, vector<1x8x128xf32>
    %27 = vector.shape_cast %26 : vector<1x8x128xf32> to vector<8x128xf32>
    %cst_10 = arith.constant 0.000000e+00 : f32
    %28 = vector.broadcast %cst_10 : f32 to vector<8x128xf32>
    %29 = arith.cmpf ogt, %27, %28 : vector<8x128xf32>
    %30 = math.log %27 : vector<8x128xf32>
    %cst_11 = arith.constant 0.000000e+00 : f32
    %31 = vector.broadcast %cst_11 : f32 to vector<8x128xf32>
    %32 = arith.select %29, %30, %31 : vector<8x128xi1>, vector<8x128xf32>
    %33 = arith.addf %21, %32 : vector<8x128xf32>
    %34 = arith.extui %29 : vector<8x128xi1> to vector<8x128xi32>
    %c4_i32 = arith.constant 4 : i32
    %35 = vector.broadcast %c4_i32 : i32 to vector<8x128xi32>
    %36 = arith.muli %34, %35 : vector<8x128xi32>
    %37 = arith.addi %25, %36 : vector<8x128xi32>
    %c3 = arith.constant 3 : index
    %c0_12 = arith.constant 0 : index
    %c0_13 = arith.constant 0 : index
    %38 = vector.load %arg1[%c3, %c0_12, %c0_13] : memref<4x8x128xf32, #tpu.memory_space<vmem>>, vector<1x8x128xf32>
    %39 = vector.shape_cast %38 : vector<1x8x128xf32> to vector<8x128xf32>
    %cst_14 = arith.constant 0.000000e+00 : f32
    %40 = vector.broadcast %cst_14 : f32 to vector<8x128xf32>
    %41 = arith.cmpf ogt, %39, %40 : vector<8x128xf32>
    %42 = math.log %39 : vector<8x128xf32>
    %cst_15 = arith.constant 0.000000e+00 : f32
    %43 = vector.broadcast %cst_15 : f32 to vector<8x128xf32>
    %44 = arith.select %41, %42, %43 : vector<8x128xi1>, vector<8x128xf32>
    %45 = arith.addf %33, %44 : vector<8x128xf32>
    %46 = arith.extui %41 : vector<8x128xi1> to vector<8x128xi32>
    %c8_i32 = arith.constant 8 : i32
    %47 = vector.broadcast %c8_i32 : i32 to vector<8x128xi32>
    %48 = arith.muli %46, %47 : vector<8x128xi32>
    %49 = arith.addi %37, %48 : vector<8x128xi32>
    %c0_16 = arith.constant 0 : index
    %50 = memref.load %arg2[%c0_16] : memref<16xf32, #tpu.memory_space<smem>>
    %51 = vector.broadcast %50 : f32 to vector<8x128xf32>
    %c1_i32_17 = arith.constant 1 : i32
    %52 = vector.broadcast %c1_i32_17 : i32 to vector<8x128xi32>
    %53 = arith.cmpi eq, %49, %52 : vector<8x128xi32>
    %c1_18 = arith.constant 1 : index
    %54 = memref.load %arg2[%c1_18] : memref<16xf32, #tpu.memory_space<smem>>
    %55 = vector.broadcast %54 : f32 to vector<8x128xf32>
    %56 = arith.select %53, %55, %51 : vector<8x128xi1>, vector<8x128xf32>
    %c2_i32_19 = arith.constant 2 : i32
    %57 = vector.broadcast %c2_i32_19 : i32 to vector<8x128xi32>
    %58 = arith.cmpi eq, %49, %57 : vector<8x128xi32>
    %c2_20 = arith.constant 2 : index
    %59 = memref.load %arg2[%c2_20] : memref<16xf32, #tpu.memory_space<smem>>
    %60 = vector.broadcast %59 : f32 to vector<8x128xf32>
    %61 = arith.select %58, %60, %56 : vector<8x128xi1>, vector<8x128xf32>
    %c3_i32 = arith.constant 3 : i32
    %62 = vector.broadcast %c3_i32 : i32 to vector<8x128xi32>
    %63 = arith.cmpi eq, %49, %62 : vector<8x128xi32>
    %c3_21 = arith.constant 3 : index
    %64 = memref.load %arg2[%c3_21] : memref<16xf32, #tpu.memory_space<smem>>
    %65 = vector.broadcast %64 : f32 to vector<8x128xf32>
    %66 = arith.select %63, %65, %61 : vector<8x128xi1>, vector<8x128xf32>
    %c4_i32_22 = arith.constant 4 : i32
    %67 = vector.broadcast %c4_i32_22 : i32 to vector<8x128xi32>
    %68 = arith.cmpi eq, %49, %67 : vector<8x128xi32>
    %c4 = arith.constant 4 : index
    %69 = memref.load %arg2[%c4] : memref<16xf32, #tpu.memory_space<smem>>
    %70 = vector.broadcast %69 : f32 to vector<8x128xf32>
    %71 = arith.select %68, %70, %66 : vector<8x128xi1>, vector<8x128xf32>
    %c5_i32 = arith.constant 5 : i32
    %72 = vector.broadcast %c5_i32 : i32 to vector<8x128xi32>
    %73 = arith.cmpi eq, %49, %72 : vector<8x128xi32>
    %c5 = arith.constant 5 : index
    %74 = memref.load %arg2[%c5] : memref<16xf32, #tpu.memory_space<smem>>
    %75 = vector.broadcast %74 : f32 to vector<8x128xf32>
    %76 = arith.select %73, %75, %71 : vector<8x128xi1>, vector<8x128xf32>
    %c6_i32 = arith.constant 6 : i32
    %77 = vector.broadcast %c6_i32 : i32 to vector<8x128xi32>
    %78 = arith.cmpi eq, %49, %77 : vector<8x128xi32>
    %c6 = arith.constant 6 : index
    %79 = memref.load %arg2[%c6] : memref<16xf32, #tpu.memory_space<smem>>
    %80 = vector.broadcast %79 : f32 to vector<8x128xf32>
    %81 = arith.select %78, %80, %76 : vector<8x128xi1>, vector<8x128xf32>
    %c7_i32 = arith.constant 7 : i32
    %82 = vector.broadcast %c7_i32 : i32 to vector<8x128xi32>
    %83 = arith.cmpi eq, %49, %82 : vector<8x128xi32>
    %c7 = arith.constant 7 : index
    %84 = memref.load %arg2[%c7] : memref<16xf32, #tpu.memory_space<smem>>
    %85 = vector.broadcast %84 : f32 to vector<8x128xf32>
    %86 = arith.select %83, %85, %81 : vector<8x128xi1>, vector<8x128xf32>
    %c8_i32_23 = arith.constant 8 : i32
    %87 = vector.broadcast %c8_i32_23 : i32 to vector<8x128xi32>
    %88 = arith.cmpi eq, %49, %87 : vector<8x128xi32>
    %c8 = arith.constant 8 : index
    %89 = memref.load %arg2[%c8] : memref<16xf32, #tpu.memory_space<smem>>
    %90 = vector.broadcast %89 : f32 to vector<8x128xf32>
    %91 = arith.select %88, %90, %86 : vector<8x128xi1>, vector<8x128xf32>
    %c9_i32 = arith.constant 9 : i32
    %92 = vector.broadcast %c9_i32 : i32 to vector<8x128xi32>
    %93 = arith.cmpi eq, %49, %92 : vector<8x128xi32>
    %c9 = arith.constant 9 : index
    %94 = memref.load %arg2[%c9] : memref<16xf32, #tpu.memory_space<smem>>
    %95 = vector.broadcast %94 : f32 to vector<8x128xf32>
    %96 = arith.select %93, %95, %91 : vector<8x128xi1>, vector<8x128xf32>
    %c10_i32 = arith.constant 10 : i32
    %97 = vector.broadcast %c10_i32 : i32 to vector<8x128xi32>
    %98 = arith.cmpi eq, %49, %97 : vector<8x128xi32>
    %c10 = arith.constant 10 : index
    %99 = memref.load %arg2[%c10] : memref<16xf32, #tpu.memory_space<smem>>
    %100 = vector.broadcast %99 : f32 to vector<8x128xf32>
    %101 = arith.select %98, %100, %96 : vector<8x128xi1>, vector<8x128xf32>
    %c11_i32 = arith.constant 11 : i32
    %102 = vector.broadcast %c11_i32 : i32 to vector<8x128xi32>
    %103 = arith.cmpi eq, %49, %102 : vector<8x128xi32>
    %c11 = arith.constant 11 : index
    %104 = memref.load %arg2[%c11] : memref<16xf32, #tpu.memory_space<smem>>
    %105 = vector.broadcast %104 : f32 to vector<8x128xf32>
    %106 = arith.select %103, %105, %101 : vector<8x128xi1>, vector<8x128xf32>
    %c12_i32 = arith.constant 12 : i32
    %107 = vector.broadcast %c12_i32 : i32 to vector<8x128xi32>
    %108 = arith.cmpi eq, %49, %107 : vector<8x128xi32>
    %c12 = arith.constant 12 : index
    %109 = memref.load %arg2[%c12] : memref<16xf32, #tpu.memory_space<smem>>
    %110 = vector.broadcast %109 : f32 to vector<8x128xf32>
    %111 = arith.select %108, %110, %106 : vector<8x128xi1>, vector<8x128xf32>
    %c13_i32 = arith.constant 13 : i32
    %112 = vector.broadcast %c13_i32 : i32 to vector<8x128xi32>
    %113 = arith.cmpi eq, %49, %112 : vector<8x128xi32>
    %c13 = arith.constant 13 : index
    %114 = memref.load %arg2[%c13] : memref<16xf32, #tpu.memory_space<smem>>
    %115 = vector.broadcast %114 : f32 to vector<8x128xf32>
    %116 = arith.select %113, %115, %111 : vector<8x128xi1>, vector<8x128xf32>
    %c14_i32 = arith.constant 14 : i32
    %117 = vector.broadcast %c14_i32 : i32 to vector<8x128xi32>
    %118 = arith.cmpi eq, %49, %117 : vector<8x128xi32>
    %c14 = arith.constant 14 : index
    %119 = memref.load %arg2[%c14] : memref<16xf32, #tpu.memory_space<smem>>
    %120 = vector.broadcast %119 : f32 to vector<8x128xf32>
    %121 = arith.select %118, %120, %116 : vector<8x128xi1>, vector<8x128xf32>
    %c15_i32 = arith.constant 15 : i32
    %122 = vector.broadcast %c15_i32 : i32 to vector<8x128xi32>
    %123 = arith.cmpi eq, %49, %122 : vector<8x128xi32>
    %c15 = arith.constant 15 : index
    %124 = memref.load %arg2[%c15] : memref<16xf32, #tpu.memory_space<smem>>
    %125 = vector.broadcast %124 : f32 to vector<8x128xf32>
    %126 = arith.select %123, %125, %121 : vector<8x128xi1>, vector<8x128xf32>
    %127 = arith.addf %126, %45 : vector<8x128xf32>
    %c0_24 = arith.constant 0 : index
    %c0_25 = arith.constant 0 : index
    %128 = vector.load %arg3[%c0_24, %c0_25] : memref<8x128xf32, #tpu.memory_space<vmem>>, vector<8x128xf32>
    tpu.vector_store %arg3[%c0_24, %c0_25], %127 {strides = array<i32>} : memref<8x128xf32, #tpu.memory_space<vmem>>, vector<8x128xf32>,
    return
  }
  func.func @transform_0(%arg0: i32) -> (i32, i32, i32) {
    %c0_i32 = arith.constant 0 : i32
    %c0_i32_0 = arith.constant 0 : i32
    %c0_i32_1 = arith.constant 0 : i32
    return %c0_i32, %arg0, %c0_i32_0 : i32, i32, i32
  }
  func.func @transform_1(%arg0: i32) -> i32 {
    %c0_i32 = arith.constant 0 : i32
    %c0_i32_0 = arith.constant 0 : i32
    return %c0_i32 : i32
  }
  func.func @transform_2(%arg0: i32) -> (i32, i32) {
    %c0_i32 = arith.constant 0 : i32
    %c0_i32_0 = arith.constant 0 : i32
    return %arg0, %c0_i32 : i32, i32
  }
}

</mosaic_0001>

<bundles_post_ra>
// kernel: tpu_custom_call.1
= control target key start
LH: loop header
LB: loop body
LE: loop exit
PB: predicated region body
PF: predicated region fallthrough
CT: control target
= control target key end

     0   :  { %7 = vsyncpa [#allocation3], 0  ;;  %s367_s0 = inlined_call_operand.hbm [shape: f32[4,8,128], index: 0, kind: input, shape index: {}]   ;;  %s368_s1 = inlined_call_operand.hbm [shape: f32[16], index: 1, kind: input, shape index: {}]   ;;  %s369_s2 = inlined_call_operand.hbm [shape: f32[8,128], index: 2, kind: output, shape index: {}]  }
   0x1   :  { %8 = vsyncpa [#allocation5], 0 }
   0x2   :  { %9 = vsyncpa [#allocation4], 0  ;;  %s14_s11 = sshll.u32 %s367_s0, 4  ;;  %s255_s12 = smov [#allocation2]   ;;  %s15_s11 = int_to_ptr.hbm [resolvable:$true] %s14_s11 }
   0x3   :  { %s16_s13 = sshll.u32 %s255_s12, 4  ;;  %s28_s16 = sshll.u32 %s368_s1, 4  ;;  %s17_s13 = int_to_ptr.vmem [resolvable:$true] %s16_s13  ;;  %s29_s16 = int_to_ptr.hbm [resolvable:$true] %s28_s16 }
   0x4   :  { %s256_s17 = smov 128   ;;  %s257_s18 = smov 8  }
   0x5   :  { %22 = dma.hbm_to_vmem [thread:$0]  %s15_s11, 512, %s17_s13, [#allocation3], %s256_s17, %s256_s17, %s257_s18  }
   0x6   :  { %s258_s19 = smov [#allocation6]  }
   0x7   :  { %31 = dma.hbm_to_smem %s29_s16, 16, %s258_s19, [#allocation5]  }
   0x8   :  { %249 = dma.done.wait [#allocation3], 512  }
   0x9   :  { %250 = vsyncadd [#allocation3], 4294966784 }
   0xa   :  { %251 = dma.done.wait [#allocation5], 16  }
   0xb   :  { %252 = vsyncadd [#allocation5], 4294967280 }
   0xc   :  { %40 = sfence }
   0xd   :  { %v41_v0 = vld [vmem:[#allocation2] sm:$0xff]  ;;  %v49_v1 = vld [vmem:[#allocation2 + $0x8] sm:$0xff]  ;;  %v282_v2 = vld [vmem:[#allocation2 + $0x10] sm:$0xff]  ;;  %s284_s0 = sld [smem:[#allocation6]]  ;;  %v259_v4 = vmov 0   ;;  %s260_s6 = smov [#allocation7]  }
   0xe   :  { %vm42_vm0 = vcmp.gt.f32.partialorder %v41_v0, 0.0  ;;  %181 = vlog2.f32 %v41_v0  ;;  %vm50_vm1 = vcmp.gt.f32.partialorder %v49_v1, 0.0  ;;  %vm60_vm2 = vcmp.gt.f32.partialorder %v282_v2, 0.0  ;;  %v287_v3 = vld [vmem:[#allocation2 + $0x18] sm:$0xff]  ;;  %s289_s1 = sld [smem:[#allocation6 + $0x1]]  ;;  %s147_s7 = sshll.u32 %s260_s6, 4  ;;  %s148_s7 = int_to_ptr.vmem [resolvable:$true] %s147_s7 }
   0xf   :  { %v47_v5 = vsel %vm42_vm0, 1, %v259_v4  ;;  %183 = vlog2.f32 %v49_v1  ;;  %v55_v6 = vsel %vm50_vm1, 1, %v259_v4  ;;  %v65_v7 = vsel %vm60_vm2, 1, %v259_v4  ;;  %s295_s20 = sld [smem:[#allocation6 + $0x2]]  ;;  %s149_s10 = sshll.u32 %s369_s2, 4  ;;  %s150_s10 = int_to_ptr.hbm [resolvable:$true] %s149_s10 }
  0x10   :  { %v56_v8 = vmul.u32 2, %v55_v6  ;;  %185 = vlog2.f32 %v282_v2  ;;  %v66_v9 = vmul.u32 4, %v65_v7  ;;  %vm70_vm3 = vcmp.gt.f32.partialorder %v287_v3, 0.0  ;;  %s299_s21 = sld [smem:[#allocation6 + $0x3]] }
  0x11   :  { %187 = vlog2.f32 %v287_v3  ;;  %v75_v10 = vsel %vm70_vm3, 1, %v259_v4  ;;  %s304_s22 = sld [smem:[#allocation6 + $0x4]] }
  0x12   :  { %v57_v11 = vadd.s32 %v56_v8, %v47_v5  ;;  %v76_v12 = vmul.u32 8, %v75_v10  ;;  %s306_s23 = sld [smem:[#allocation6 + $0x5]] }
  0x13   :  { %s308_s24 = sld [smem:[#allocation6 + $0x6]]  ;;  %v79_v20 = vstv %s284_s0 }
  0x14   :  { %v182_v13 = vpop.eup %181  ;;  %v67_v14 = vadd.s32 %v66_v9, %v57_v11  ;;  %s310_s25 = sld [smem:[#allocation6 + $0x7]]  ;;  %v82_v21 = vstv %s289_s1 }
  0x15   :  { %v184_v15 = vpop.eup %183  ;;  %v44_v16 = vmul.f32 0.6931472, %v182_v13  ;;  %s312_s26 = sld [smem:[#allocation6 + $0x8]]  ;;  %v86_v23 = vstv %s295_s20 }
  0x16   :  { %v186_v17 = vpop.eup %185  ;;  %v52_v18 = vmul.f32 0.6931472, %v184_v15  ;;  %v314_v19 = vadd.s32 %v76_v12, %v67_v14  ;;  %s318_s27 = sld [smem:[#allocation6 + $0x9]]  ;;  %v90_v24 = vstv %s299_s21 }
  0x17   :  { %v188_v22 = vpop.eup %187  ;;  %s322_s28 = sld [smem:[#allocation6 + $0xa]]  ;;  %v45_v25 = vsel %vm42_vm0, %v44_v16, 0.0  ;;  %v62_v27 = vmul.f32 0.6931472, %v186_v17  ;;  %v94_v29 = vstv %s304_s22 }
  0x18   :  { %v53_v26 = vsel %vm50_vm1, %v52_v18, 0.0  ;;  %vm80_vm4 = vcmp.eq.s32.totalorder %v314_v19, 1  ;;  %vm84_vm5 = vcmp.eq.s32.totalorder %v314_v19, 2  ;;  %vm88_vm6 = vcmp.eq.s32.totalorder %v314_v19, 3  ;;  %s330_s29 = sld [smem:[#allocation6 + $0xb]] }
  0x19   :  { %v83_v28 = vsel %vm80_vm4, %v82_v21, %v79_v20  ;;  %v72_v30 = vmul.f32 0.6931472, %v188_v22  ;;  %vm92_vm7 = vcmp.eq.s32.totalorder %v314_v19, 4  ;;  %vm96_vm8 = vcmp.eq.s32.totalorder %v314_v19, 5  ;;  %s334_s30 = sld [smem:[#allocation6 + $0xc]] }
  0x1a   :  { %v87_v31 = vsel %vm84_vm5, %v86_v23, %v83_v28  ;;  %v54_v32 = vadd.f32 %v53_v26, %v45_v25  ;;  %v98_v34 = vstv %s306_s23  ;;  %vm100_vm9 = vcmp.eq.s32.totalorder %v314_v19, 6  ;;  %s338_s3 = sld [smem:[#allocation6 + $0xd]] }
  0x1b   :  { %v91_v33 = vsel %vm88_vm6, %v90_v24, %v87_v31  ;;  %v102_v36 = vstv %s308_s24  ;;  %vm104_vm10 = vcmp.eq.s32.totalorder %v314_v19, 7  ;;  %v106_v37 = vstv %s310_s25  ;;  %s343_s4 = sld [smem:[#allocation6 + $0xe]] }
  0x1c   :  { %v95_v35 = vsel %vm92_vm7, %v94_v29, %v91_v33  ;;  %v63_v38 = vsel %vm60_vm2, %v62_v27, 0.0  ;;  %vm108_vm11 = vcmp.eq.s32.totalorder %v314_v19, 8  ;;  %v110_v40 = vstv %s312_s26  ;;  %s174_s5 = sld [smem:[#allocation6 + $0xf]] }
  0x1d   :  { %v99_v39 = vsel %vm96_vm8, %v98_v34, %v95_v35  ;;  %vm112_vm12 = vcmp.eq.s32.totalorder %v314_v19, 9  ;;  %v114_v42 = vstv %s318_s27  ;;  %vm116_vm13 = vcmp.eq.s32.totalorder %v314_v19, 10 }
  0x1e   :  { %v103_v41 = vsel %vm100_vm9, %v102_v36, %v99_v39  ;;  %v118_v44 = vstv %s322_s28  ;;  %v64_v45 = vadd.f32 %v63_v38, %v54_v32  ;;  %vm120_vm14 = vcmp.eq.s32.totalorder %v314_v19, 11 }
  0x1f   :  { %v107_v43 = vsel %vm104_vm10, %v106_v37, %v103_v41  ;;  %v122_v47 = vstv %s330_s29  ;;  %v73_v48 = vsel %vm70_vm3, %v72_v30, 0.0  ;;  %vm124_vm15 = vcmp.eq.s32.totalorder %v314_v19, 12 }
  0x20   :  { %v111_v46 = vsel %vm108_vm11, %v110_v40, %v107_v43  ;;  %v126_v50 = vstv %s334_s30  ;;  %vm128_vm0 = vcmp.eq.s32.totalorder %v314_v19, 13  ;;  %v130_v52 = vstv %s338_s3 }
  0x21   :  { %v115_v49 = vsel %vm112_vm12, %v114_v42, %v111_v46  ;;  %vm132_vm1 = vcmp.eq.s32.totalorder %v314_v19, 14  ;;  %v134_v54 = vstv %s343_s4  ;;  %v74_v55 = vadd.f32 %v73_v48, %v64_v45 }
  0x22   :  { %v119_v51 = vsel %vm116_vm13, %v118_v44, %v115_v49  ;;  %vm136_vm2 = vcmp.eq.s32.totalorder %v314_v19, 15  ;;  %v138_v57 = vstv %s174_s5 }
  0x23   :  { %v123_v53 = vsel %vm120_vm14, %v122_v47, %v119_v51 }
  0x24   :  { %v127_v56 = vsel %vm124_vm15, %v126_v50, %v123_v53 }
  0x25   :  { %v131_v58 = vsel %vm128_vm0, %v130_v52, %v127_v56 }
  0x26   :  { %v135_v59 = vsel %vm132_vm1, %v134_v54, %v131_v58 }
  0x27   :  { %v139_v60 = vsel %vm136_vm2, %v138_v57, %v135_v59 }
  0x28   :  { %v140_v61 = vadd.f32 %v139_v60, %v74_v55 }
  0x2a   :  { %141 = vst [vmem:[#allocation7] sm:$0xff] %v140_v61 }
  0x2b   :  { %152 = dma.vmem_to_hbm [thread:$0]  %s148_s7, 128, %s150_s10, [#allocation4]  }
  0x2c   :  { %253 = dma.done.wait [#allocation4], 128  }
  0x2d   :  { %254 = vsyncadd [#allocation4], 4294967168 }
  0x2e   :  { %157 = vsyncpa [#allocation3], 1 }
  0x2f   :  { %158 = vsyncpa [#allocation4], 1 }
  0x30   :  { %159 = vsyncpa [#allocation5], 1 }

</bundles_post_ra>
